<compile_context>
chip_gen: v5e
topology: v5e:2x2
jax: 0.10.0
libtpu: 0.0.40
codegen_flags: <defaults>
</compile_context>

<pallas_src>
import functools

import jax
import jax.numpy as jnp
from jax.experimental import pallas as pl
from jax.experimental.pallas import tpu as pltpu


# -----------------------------------------------------------------------------
# Pallas kernel: streamed sequence-sum + fused (D, 2Z) linear head
# -----------------------------------------------------------------------------
def encoder_head_kernel(h_ref, w_ref, out_ref, acc_ref):
    s = pl.program_id(2)                       # sequence-chunk (reduction) axis

    @pl.when(s == 0)
    def _():
        acc_ref[...] = jnp.zeros_like(acc_ref)

    # bf16 tile -> f32 before the sublane (XLU) reduction — v5e has no bf16
    # VALU — and accumulate the running sum in the f32 scratch.
    acc_ref[...] += jnp.sum(h_ref[...].astype(jnp.float32), axis=1)

    @pl.when(s == pl.num_programs(2) - 1)
    def _():
        # 1/S (mean) is pre-folded into the bf16 weight at parameter-prep time;
        # bf16 x bf16 -> f32 on the MXU. Bias add + cross-split partial sum
        # happen in the tiny plain-JAX epilogue (matmul is linear).
        out_ref[...] = jnp.dot(
            acc_ref[...].astype(w_ref.dtype), w_ref[...],
            preferred_element_type=jnp.float32)


# -----------------------------------------------------------------------------
# Tiling helpers (generation-aware VMEM budgeting)
# -----------------------------------------------------------------------------
def _vmem_capacity_bytes():
    try:
        return int(pltpu.get_tpu_info().vmem_capacity_bytes)
    except Exception:
        return 64 << 20          # conservative default (v7x per-core VMEM)


def _pick_batch_tile(B):
    # Keep the output block's second-minor dim valid (multiple of 8 or == B).
    return 8 if (B % 8 == 0 and B > 8) else B


def _pick_seq_tile(tb, S, D, itemsize, budget_bytes):
    """Largest sequence chunk dividing S that fits the per-tile VMEM budget.

    Prefers multiples of 16 (bf16 packs (16, 128) per vreg along sublanes),
    then 8. Never returns an over-budget full-S tile if a smaller divisor
    exists (fixes the old fallback)."""
    def fits(ts):
        return tb * ts * D * itemsize <= budget_bytes

    if fits(S):
        return S
    for step in (16, 8):
        cands = [ts for ts in range(step, S, step) if S % ts == 0]
        if cands:
            fitting = [ts for ts in cands if fits(ts)]
            return max(fitting) if fitting else min(cands)
    return S   # no smaller multiple-of-8 divisor exists; take S whole


# -----------------------------------------------------------------------------
# Pallas wrapper
# -----------------------------------------------------------------------------
def encoder_head(hidden, w_head, *, seq_tile=None, batch_tile=None,
                 tile_budget_bytes=None):
    """hidden: (B, S, D) bf16; w_head: (D, 2Z) bf16 (already scaled by 1/S).
    Returns the fused (B, 2Z) projection [mu | log_var] WITHOUT bias."""
    B, S, D = hidden.shape
    Z2 = w_head.shape[1]

    vmem_cap = _vmem_capacity_bytes()
    vmem_limit = max(32 << 20, int(0.75 * vmem_cap))     # 48 MiB v7x, 96 MiB v5e/v6e
    if tile_budget_bytes is None:
        # Leave room for double-buffering + the f32 upcast temporary + weights.
        tile_budget_bytes = min(vmem_limit // 6, 12 << 20)

    tb = batch_tile if batch_tile is not None else _pick_batch_tile(B)
    ts = seq_tile if seq_tile is not None else _pick_seq_tile(
        tb, S, D, hidden.dtype.itemsize, tile_budget_bytes)
    assert B % tb == 0, (B, tb)
    assert S % ts == 0, (S, ts)

    n_b = B // tb
    n_chunks = S // ts
    # If the batch grid collapses to 1 (tiny B), split the sequence reduction
    # across a leading "parallel" axis so the second TensorCore (v7x megacore)
    # has work; per-split partial projections are summed outside the kernel.
    n_split = 2 if (n_b == 1 and n_chunks % 2 == 0 and n_chunks >= 2) else 1
    cps = n_chunks // n_split

    grid = (n_split, n_b, cps)

    hidden_map = lambda p, b, s, _cps=cps: (b, p * _cps + s, 0)

    partials = pl.pallas_call(
        encoder_head_kernel,
        out_shape=jax.ShapeDtypeStruct((n_split, B, Z2), jnp.float32),
        grid_spec=pltpu.PrefetchScalarGridSpec(
            num_scalar_prefetch=0,
            grid=grid,
            in_specs=[
                # Streamed, auto-pipelined hidden-state tiles.
                pl.BlockSpec((tb, ts, D), hidden_map),
                # Fused bf16 head weight: grid-invariant -> resident in VMEM.
                pl.BlockSpec((D, Z2), lambda p, b, s: (0, 0)),
            ],
            # Output block constant along the reduction axis (accumulator);
            # the split dim is squeezed out of the kernel view.
            out_specs=pl.BlockSpec((None, tb, Z2), lambda p, b, s: (p, b, 0)),
            scratch_shapes=[pltpu.VMEM((tb, D), jnp.float32)],
        ),
        compiler_params=pltpu.CompilerParams(
            dimension_semantics=("parallel", "parallel", "arbitrary"),
            vmem_limit_bytes=vmem_limit,
        ),
        cost_estimate=pl.CostEstimate(
            flops=2 * B * S * D + 2 * n_split * B * D * Z2,
            transcendentals=0,
            bytes_accessed=(B * S * D * hidden.dtype.itemsize
                            + D * Z2 * w_head.dtype.itemsize
                            + n_split * B * Z2 * 4),
        ),
    )(hidden, w_head)

    return jnp.sum(partials, axis=0)            # (B, 2Z)


# -----------------------------------------------------------------------------
# Parameter prep (hoisted out of the per-call path) + full Encoder forward
# -----------------------------------------------------------------------------
def prepare_encoder_params(params, seq_len):
    """Precompute the fused head weight/bias once: concat [W_mu | W_var],
    fold in the 1/S mean factor, cast the weight to bf16 (halves resident
    VMEM; MXU-native). Bias stays f32 and is added in the epilogue."""
    w_cat = jnp.concatenate([params["w_mu"], params["w_var"]], axis=1) / seq_len
    b_cat = jnp.concatenate([params["b_mu"], params["b_var"]], axis=1)
    out = dict(params)
    out["w_head"] = w_cat.astype(jnp.bfloat16)          # (D, 2Z)
    out["b_head"] = b_cat.astype(jnp.float32)            # (1, 2Z)
    return out


def encoder_forward(params, input_ids, attention_mask, *, seq_tile=None,
                    tile_budget_bytes=None):
    # TODO(synk): the pretrained 12-layer T5 backbone (T5Model.from_pretrained)
    # requires an external checkpoint and has no in-script Pallas equivalent;
    # a deterministic bf16 embedding lookup stands in for last_hidden_state
    # (the attention_mask would only affect this backbone, not the pooling).
    del attention_mask
    hidden = jnp.take(params["embed_table"], input_ids, axis=0)   # (B, S, D) bf16

    out = encoder_head(hidden, params["w_head"], seq_tile=seq_tile,
                       tile_budget_bytes=tile_budget_bytes)
    out = out + params["b_head"]                                  # (B, 2Z)
    Z = params["b_head"].shape[-1] // 2
    return out[:, :Z], out[:, Z:]


# -----------------------------------------------------------------------------
# Self-test
# -----------------------------------------------------------------------------
if __name__ == "__main__":
    # Small shapes consistent with the module: batch=2, seq=64,
    # d_model=128 (stand-in for t5-base's 768), z_dim=64 (stand-in for 512).
    B, S, D, Z, VOCAB = 2, 64, 128, 64, 128

    key = jax.random.PRNGKey(0)
    k_emb, k_wmu, k_bmu, k_wvar, k_bvar, k_ids = jax.random.split(key, 6)

    raw_params = {
        "embed_table": (jax.random.normal(k_emb, (VOCAB, D), jnp.float32)
                        * 0.02).astype(jnp.bfloat16),
        "w_mu":  jax.random.normal(k_wmu,  (D, Z), jnp.float32) * 0.02,
        "b_mu":  jax.random.normal(k_bmu,  (1, Z), jnp.float32) * 0.02,
        "w_var": jax.random.normal(k_wvar, (D, Z), jnp.float32) * 0.02,
        "b_var": jax.random.normal(k_bvar, (1, Z), jnp.float32) * 0.02,
    }
    params = prepare_encoder_params(raw_params, S)

    input_ids = jax.random.randint(k_ids, (B, S), 0, VOCAB, dtype=jnp.int32)
    # attention_mask is only consumed by the (stand-in) T5 backbone.
    attention_mask = jnp.concatenate(
        [jnp.ones((B, S - 8), jnp.int32), jnp.zeros((B, 8), jnp.int32)], axis=1)

    # seq_tile=16 -> 4 sequence chunks; with B=2 the batch grid is 1, so the
    # kernel also exercises the 2-way "parallel" sequence split (megacore).
    fwd = jax.jit(functools.partial(encoder_forward, seq_tile=16))
    mu, log_var = fwd(params, input_ids, attention_mask)
    jax.block_until_ready((mu, log_var))

    # Pure-JAX reference of the Pallas-covered compute: plain UNMASKED mean
    # over the sequence (matching torch.mean(t5_output, dim=1)) + two heads.
    hidden_ref = jnp.take(raw_params["embed_table"], input_ids,
                          axis=0).astype(jnp.float32)
    pooled_ref = jnp.mean(hidden_ref, axis=1)
    mu_ref = jnp.dot(pooled_ref, raw_params["w_mu"],
                     precision=jax.lax.Precision.HIGHEST) + raw_params["b_mu"]
    lv_ref = jnp.dot(pooled_ref, raw_params["w_var"],
                     precision=jax.lax.Precision.HIGHEST) + raw_params["b_var"]

    assert mu.shape == (B, Z) and log_var.shape == (B, Z)
    assert jnp.allclose(mu, mu_ref, atol=1e-4, rtol=1e-3)
    assert jnp.allclose(log_var, lv_ref, atol=1e-4, rtol=1e-3)

    print("KERNEL_OK")
</pallas_src>

<mosaic_0001>
module attributes {stable_mosaic.version = 11 : i64} {
  func.func @encoder_head_kernel(%arg0: i32, %arg1: i32, %arg2: i32, %arg3: memref<2x16x128xbf16, #tpu.memory_space<vmem>>, %arg4: memref<128x128xbf16, #tpu.memory_space<vmem>>, %arg5: memref<1x2x128xf32, #tpu.memory_space<vmem>>, %arg6: memref<2x128xf32, #tpu.memory_space<vmem>>) attributes {dimension_semantics = [#tpu.dimension_semantics<parallel>, #tpu.dimension_semantics<parallel>, #tpu.dimension_semantics<arbitrary>], iteration_bounds = array<i64: 2, 1, 2>, scalar_prefetch = 0 : i64, scratch_operands = 1 : i64, tpu.core_type = #tpu.core_type<tc>, window_params = [{transform_indices = @transform_0, window_bounds = array<i64: 2, 16, 128>}, {pipeline_mode = #tpu.pipeline_mode<synchronous>, transform_indices = @transform_1, window_bounds = array<i64: 128, 128>}, {transform_indices = @transform_2, window_bounds = array<i64: 1, 2, 128>}]} {
    %c0_i32 = arith.constant 0 : i32
    %0 = arith.cmpi eq, %arg2, %c0_i32 : i32
    %1 = arith.extui %0 : i1 to i32
    %c0_i32_0 = arith.constant 0 : i32
    %2 = arith.cmpi ne, %1, %c0_i32_0 : i32
    scf.if %2 {
      %cst_8 = arith.constant 0.000000e+00 : f32
      %12 = vector.broadcast %cst_8 : f32 to vector<2x128xf32>
      %c0_9 = arith.constant 0 : index
      %c0_10 = arith.constant 0 : index
      %13 = vector.load %arg6[%c0_9, %c0_10] : memref<2x128xf32, #tpu.memory_space<vmem>>, vector<2x128xf32>
      tpu.vector_store %arg6[%c0_9, %c0_10], %12 {strides = array<i32>} : memref<2x128xf32, #tpu.memory_space<vmem>>, vector<2x128xf32>,
    } else {
    }
    %c0 = arith.constant 0 : index
    %c0_1 = arith.constant 0 : index
    %3 = vector.load %arg6[%c0, %c0_1] : memref<2x128xf32, #tpu.memory_space<vmem>>, vector<2x128xf32>
    %c0_2 = arith.constant 0 : index
    %c0_3 = arith.constant 0 : index
    %c0_4 = arith.constant 0 : index
    %4 = vector.load %arg3[%c0_2, %c0_3, %c0_4] : memref<2x16x128xbf16, #tpu.memory_space<vmem>>, vector<2x16x128xbf16>
    %5 = arith.extf %4 : vector<2x16x128xbf16> to vector<2x16x128xf32>
    %cst = arith.constant dense<0.000000e+00> : vector<2x128xf32>
    %6 = vector.multi_reduction <add>, %5, %cst [1] : vector<2x16x128xf32> to vector<2x128xf32>
    %7 = arith.addf %3, %6 : vector<2x128xf32>
    %c0_5 = arith.constant 0 : index
    %c0_6 = arith.constant 0 : index
    %8 = vector.load %arg6[%c0_5, %c0_6] : memref<2x128xf32, #tpu.memory_space<vmem>>, vector<2x128xf32>
    tpu.vector_store %arg6[%c0_5, %c0_6], %7 {strides = array<i32>} : memref<2x128xf32, #tpu.memory_space<vmem>>, vector<2x128xf32>,
    %c1_i32 = arith.constant 1 : i32
    %9 = arith.cmpi eq, %arg2, %c1_i32 : i32
    %10 = arith.extui %9 : i1 to i32
    %c0_i32_7 = arith.constant 0 : i32
    %11 = arith.cmpi ne, %10, %c0_i32_7 : i32
    scf.if %11 {
      %c0_8 = arith.constant 0 : index
      %c0_9 = arith.constant 0 : index
      %12 = vector.load %arg6[%c0_8, %c0_9] : memref<2x128xf32, #tpu.memory_space<vmem>>, vector<2x128xf32>
      %13 = arith.truncf %12 : vector<2x128xf32> to vector<2x128xbf16>
      %c0_10 = arith.constant 0 : index
      %c0_11 = arith.constant 0 : index
      %14 = vector.load %arg4[%c0_10, %c0_11] : memref<128x128xbf16, #tpu.memory_space<vmem>>, vector<128x128xbf16>
      %cst_12 = arith.constant dense<0.000000e+00> : vector<2x128xf32>
      %15 = tpu.matmul %13, %14, %cst_12 {dimension_numbers = #tpu.dot_dimension_numbers<[1], [0], [0], [1], [0, 0, 1, 1], [], []>} : vector<2x128xbf16>, vector<128x128xbf16>, vector<2x128xf32> -> vector<2x128xf32>
      %c0_13 = arith.constant 0 : index
      %c0_14 = arith.constant 0 : index
      %c0_15 = arith.constant 0 : index
      %16 = vector.load %arg5[%c0_13, %c0_14, %c0_15] : memref<1x2x128xf32, #tpu.memory_space<vmem>>, vector<1x2x128xf32>
      %17 = vector.shape_cast %16 : vector<1x2x128xf32> to vector<2x128xf32>
      %18 = vector.shape_cast %15 : vector<2x128xf32> to vector<1x2x128xf32>
      tpu.vector_store %arg5[%c0_13, %c0_14, %c0_15], %18 {strides = array<i32>} : memref<1x2x128xf32, #tpu.memory_space<vmem>>, vector<1x2x128xf32>,
    } else {
    }
    return
  }
  func.func @transform_0(%arg0: i32, %arg1: i32, %arg2: i32) -> (i32, i32, i32) {
    %c2_i32 = arith.constant 2 : i32
    %0 = arith.muli %arg0, %c2_i32 : i32
    %1 = arith.addi %0, %arg2 : i32
    %c0_i32 = arith.constant 0 : i32
    %c0_i32_0 = arith.constant 0 : i32
    return %arg1, %1, %c0_i32 : i32, i32, i32
  }
  func.func @transform_1(%arg0: i32, %arg1: i32, %arg2: i32) -> (i32, i32) {
    %c0_i32 = arith.constant 0 : i32
    %c0_i32_0 = arith.constant 0 : i32
    %c0_i32_1 = arith.constant 0 : i32
    return %c0_i32, %c0_i32_0 : i32, i32
  }
  func.func @transform_2(%arg0: i32, %arg1: i32, %arg2: i32) -> (i32, i32, i32) {
    %c0_i32 = arith.constant 0 : i32
    %c0_i32_0 = arith.constant 0 : i32
    return %arg0, %arg1, %c0_i32 : i32, i32, i32
  }
}

</mosaic_0001>

<bundles_post_ra>
// kernel: encoder_forward.1
= control target key start
LH: loop header
LB: loop body
LE: loop exit
PB: predicated region body
PF: predicated region fallthrough
CT: control target
= control target key end

     0   :  { %s643_s9 = smov 0   ;;  %s645_s10 = smov 0   ;;  %s759_s0 = inlined_call_operand.vmem [shape: bf16[2,64,128], index: 0, kind: input, shape index: {}]   ;;  %s760_s1 = inlined_call_operand.vmem [shape: bf16[128,128], index: 1, kind: input, shape index: {}]   ;;  %s761_s2 = inlined_call_operand.vmem [shape: f32[2,2,128], index: 2, kind: output, shape index: {}]  }
   0x1   :  { %s647_s11 = smov 0   ;;  %s649_s12 = smov 0  }
   0x2   :  { %s651_s13 = smov 0   ;;  %s653_s14 = smov 0  }
   0x3   :  { %s655_s15 = smov 0  }
   0x4 LB: > { %s24_s16 = sadd.s32 1, %s617_s13  ;;  %s31_s17 = sadd.s32 1, %s621_s14  ;;  %s625_s15 = sphi %s655_s15, %s12_s15   ;;  %s621_s14 = sphi %s653_s14, %s767_s14   ;;  %s617_s13 = sphi %s651_s13, %s766_s13   ;;  %s613_s12 = sphi %s649_s12, %s765_s12   ;;  %s609_s11 = sphi %s647_s11, %s764_s11   ;;  %s605_s10 = sphi %s645_s10, %s763_s10   ;;  %s601_s9 = sphi %s643_s9, %s762_s9  }
   0x5   : > { %p25_p0 = scmp.ge.s32.totalorder %s24_s16, 2  ;;  %p51_p1 = scmp.ne.s32.totalorder %s605_s10, %s601_s9 }
   0x6   : > { %p52_p2 = scmp.eq.s32.totalorder %s625_s15, 0  ;;  %s449_s18 = sshll.u32 %s621_s14, 1 }
   0x7   : > { %s769_s16 = smov (%p25_p0, %s24_s16), 0  ;;  %s771_s17 = smov (!%p25_p0, %s31_s17), %s621_s14 }
   0x8   : > { %p33_p3 = scmp.ge.s32.totalorder %s771_s17, 2  ;;  %p53_p4 = por %p52_p2, %p51_p1 }
   0x9   : > { %s36_s19 = sadd.s32 %s617_s13, %s449_s18  ;;  %s44_s23 = sadd.s32 1, %s605_s10 }
   0xa   : > { %s773_s17 = smov (%p33_p3, %s771_s17), 0  ;;  %p452_p6 = scmp.ge.s32.totalorder %s625_s15, 4 }
   0xb   : > { %s450_s20 = sshll.u32 %s773_s17, 1 }
   0xc   : > { %s38_s21 = sadd.s32 %s450_s20, %s769_s16  ;;  %129 = sbr.rel (%p452_p6) target bundleno = 23 (0x17), region = 20 }
   0xd   : > { %s40_s22 = ssub.s32 %s36_s19, %s38_s21 }
   0xe   : > { %p42_p5 = scmp.eq.s32.totalorder %s40_s22, 0 }
  0x10   : > { %s694_s24 = scalar_select %p42_p5, %s605_s10, %s44_s23  }
  0x11   : > { %132 = sbr.rel (!%p53_p4) target bundleno = 23 (0x17), region = 24  ;;  %s134_s25 = sand.u32 (%p53_p4), 1, %s605_s10  }
  0x12   : > { %s496_s26 = sshll.u32 (%p53_p4), %s36_s19, 3  ;;  %s453_s27 = sshll.u32 (%p53_p4), %s134_s25, 4 }
  0x13   : > { %s144_s30 = scalar_lea.vmem (%p53_p4), %s759_s0, %s496_s26  ;;  %s136_s3 = scalar_lea.vmem (%p53_p4), [#allocation3], %s453_s27 }
  0x14   : > { %v161_v0 = vld [vmem:[%s144_s30] sm:$0xff] (%p53_p4)  }
  0x15   : > { %v165_v1 = vld [vmem:[%s144_s30 + $0x20] sm:$0xff] (%p53_p4)   ;;  %162 = vst [vmem:[%s136_s3] sm:$0xff] (%p53_p4), %v161_v0  }
  0x16   : > { %166 = vst [vmem:[%s136_s3 + $0x8] sm:$0xff] %v165_v1  }
  0x17 PF: > { %p457_p7 = scmp.ge.s32.totalorder %s625_s15, 1  ;;  %p199_p8 = scmp.lt.s32.totalorder %s625_s15, 5 }
  0x19   : > { %p200_p9 = pnand %p457_p7, %p199_p8 }
  0x1a   : > { %s206_s4 = sand.u32 (!%p200_p9), 1, %s601_s9   ;;  %p233_p10 = scmp.lt.s32.totalorder (!%p200_p9), %s613_s12, 1 }
  0x1b   : > { %203 = sbr.rel (%p200_p9) target bundleno = 226 (0xe2), region = 65  ;;  %s458_s5 = sshll.u32 (!%p200_p9), %s206_s4, 4 }
  0x1c   : > { %s208_s19 = scalar_lea.vmem (!%p200_p9), [#allocation3], %s458_s5  ;;  %p460_p11 = scmp.ne.s32.totalorder (!%p200_p9), %s609_s11, 0 }
  0x20   : > { %s775_s12 = smov (!%p233_p10, %s613_s12), 1  ;;  %243 = sbr.rel (%p460_p11) target bundleno = 39 (0x27), region = 73 }
  0x21   : > { %s459_s6 = sshll.u32 %s775_s12, 1 }
  0x22   : > { %s709_s18 = scalar_lea.vmem %s761_s2, %s459_s6 }
  0x25   : > { %v627_v2 = vmov 0.0  }
  0x26   : > { %244 = vst [vmem:[#allocation2] sm:$0x3] %v627_v2 }
  0x27 PF: > { %v506_v3 = vld [vmem:[%s208_s19] sm:$0xff]   ;;  %v513_v4 = vld [vmem:[%s208_s19 + $0x8] sm:$0xff]   ;;  %vm270_vm0 = vcmask 1041409   ;;  %p461_p12 = scmp.ne.s32.totalorder %s609_s11, 1 }
  0x28   : > { %v507_v5 = vunpack.c.l.bf16 %v506_v3  ;;  %v508_v6 = vunpack.c.h.bf16 %v506_v3  ;;  %v511_v7 = vunpack.c.l.bf16 %v513_v4  ;;  %v512_v8 = vunpack.c.h.bf16 %v513_v4 }
  0x2a   : > { %v254_v9 = vadd.f32 %v508_v6, %v507_v5  ;;  %v261_v10 = vadd.f32 %v512_v8, %v511_v7 }
  0x2c   : > { %v255_v11 = vrot.slane %v254_v9, 4  ;;  %v262_v12 = vrot.slane %v261_v10, 4 }
  0x2d   : > { %v245_v21 = vld [vmem:[#allocation2] sm:$0x3] }
  0x2e   : > { %v256_v13 = vadd.f32 %v255_v11, %v254_v9  ;;  %v263_v14 = vadd.f32 %v262_v12, %v261_v10 }
  0x30   : > { %v257_v15 = vrot.slane %v256_v13, 2  ;;  %v264_v16 = vrot.slane %v263_v14, 2 }
  0x32   : > { %v258_v17 = vadd.f32 %v257_v15, %v256_v13  ;;  %v265_v18 = vadd.f32 %v264_v16, %v263_v14 }
  0x34   : > { %v259_v19 = vrot.slane %v258_v17, 1  ;;  %v266_v20 = vrot.slane %v265_v18, 1 }
  0x36   : > { %v260_v22 = vadd.f32 %v259_v19, %v258_v17  ;;  %v267_v23 = vadd.f32 %v266_v20, %v265_v18 }
  0x37   : > { %278 = sbr.rel (%p461_p12) target bundleno = 226 (0xe2), region = 77 }
  0x38   : > { %v271_v24 = vsel %vm270_vm0, %v267_v23, %v260_v22 }
  0x39   : > { %v273_v25 = vadd.f32 %v271_v24, %v245_v21 }
  0x3b   : > { %274 = vst [vmem:[#allocation2] sm:$0x3] %v273_v25 }
  0x3c   : > { %v504_v26 = vld [vmem:[%s760_s1 + $0x38] sm:$0xff]  ;;  %v503_v27 = vld [vmem:[%s760_s1 + $0x30] sm:$0xff]  ;;  %v502_v28 = vld [vmem:[%s760_s1 + $0x28] sm:$0xff] }
  0x3d   : > { %345 = vmatpush.bf16.msra.mxu0 %v504_v26  ;;  %v501_v29 = vld [vmem:[%s760_s1 + $0x20] sm:$0xff]  ;;  %v500_v30 = vld [vmem:[%s760_s1 + $0x18] sm:$0xff]  ;;  %v499_v31 = vld [vmem:[%s760_s1 + $0x10] sm:$0xff] }
  0x3e   : > { %v498_v32 = vld [vmem:[%s760_s1 + $0x8] sm:$0xff]  ;;  %v497_v33 = vld [vmem:[%s760_s1] sm:$0xff] }
  0x41   : > { %346 = vmatpush.bf16.msra.mxu0 %v503_v27 }
  0x42   : > { %v279_v34 = vld [vmem:[#allocation2] sm:$0x3] }
  0x43   : > { %v280_v35 = vpack.c.bf16 %v279_v34, %v279_v34 }
  0x45   : > { %347 = vmatpush.bf16.msra.mxu0 %v502_v28 }
  0x49   : > { %348 = vmatpush.bf16.msra.mxu0 %v501_v29 }
  0x4d   : > { %349 = vmatpush.bf16.msra.mxu0 %v500_v30 }
  0x51   : > { %350 = vmatpush.bf16.msra.mxu0 %v499_v31 }
  0x55   : > { %351 = vmatpush.bf16.msra.mxu0 %v498_v32 }
  0x59   : > { %352 = vmatpush.bf16.msra.mxu0 %v497_v33 }
  0x5c   : > { %353 = vmatmul.bf16.vlgmr.msra.gmra.mxu0 %v280_v35 }
  0xd9   : > { %v354_v36 = vpop.f32.mrf.mxu0 }
  0xda   : > { %358 = vst [vmem:[%s709_s18] sm:$0x3] %v354_v36 }
  0xe1   : > { %v356_v37 = vpop.f32.mrf.mxu0 }
  0xe2 PF: > { %s12_s15 = sadd.s32 1, %s625_s15   ;;  %s762_s9 = smov %s605_s10 }
  0xe3   : > { %p9_p13 = scmp.ge.s32.totalorder %s12_s15, 6   ;;  %s763_s10 = smov %s694_s24 }
  0xe4   : > { %s764_s11 = smov %s617_s13  ;;  %s765_s12 = smov %s621_s14 }
  0xe5   : > { %s766_s13 = smov %s769_s16  ;;  %s767_s14 = smov %s773_s17 }
  0xe6   :  { %11 = sbr.rel (!%p9_p13) target bundleno = 4 (0x4), region = 112 }

</bundles_post_ra>
